<compile_context>
chip_gen: v5e
topology: v5e:2x2
jax: 0.10.0
libtpu: 0.0.40
codegen_flags: <defaults>
</compile_context>

<pallas_src>
import math

import jax
import jax.numpy as jnp
from jax import lax
from jax.experimental import pallas as pl
from jax.experimental.pallas import tpu as pltpu


# ---------------------------------------------------------------------------
# Hardware-aware sizing helpers
# ---------------------------------------------------------------------------
def _device_kind():
    try:
        return jax.devices()[0].device_kind.lower()
    except Exception:
        return ""


def _max_kv_tile():
    kind = _device_kind()
    # v6e / v7x: 256-wide MXU -> kv tiles up to 256.  v5e (128-wide MXU, weaker VPU,
    # single vst slot) and unknown chips: cap at 128.
    return 256 if ("v6" in kind or "v7" in kind) else 128


def _vmem_limit_bytes():
    kind = _device_kind()
    # v7x only has 64 MiB VMEM per TensorCore -> leave headroom there.
    return (48 if "v7" in kind else 64) * 1024 * 1024


def _tile_candidates(n, max_tile):
    """Power-of-two tiles in [8, max_tile] dividing n (descending); full n as fallback."""
    cands = []
    t = max_tile
    while t >= 8:
        if n % t == 0:
            cands.append(t)
        t //= 2
    cands.append(n)          # full extent is always a legal block
    return cands


def _tile_cols(n, max_tile=512):
    """Lane-dim tile: must be a multiple of 128 or the full dim."""
    t = (max_tile // 128) * 128
    while t >= 128:
        if n % t == 0:
            return t
        t -= 128
    return n


def _flash_tiles(S, H):
    """(tq, tk) keeping the f32 (H, tq, tk) score slab ~<=128 KiB (no vreg spills)."""
    budget = (128 * 1024) // 4
    tq_opts = _tile_candidates(S, 128)
    tk_opts = _tile_candidates(S, _max_kv_tile())
    tq, tk = tq_opts[0], tk_opts[0]
    for cand in tk_opts:                 # shrink kv tiles first, then q tiles
        tk = cand
        if H * tq * tk <= budget:
            break
    for cand in tq_opts:
        tq = cand
        if H * tq * tk <= budget:
            break
    return tq, tk


# ---------------------------------------------------------------------------
# Tiled Linear:  y = x @ W + b   (bf16 MXU inputs, f32 accumulation)
# ---------------------------------------------------------------------------
def _linear_kernel(x_ref, w_ref, b_ref, o_ref):
    x = x_ref[...].astype(jnp.bfloat16)
    y = jnp.dot(x, w_ref[...], preferred_element_type=jnp.float32) + b_ref[...]
    o_ref[...] = y.astype(o_ref.dtype)


def _linear(x2d, w_bf16, b_f32, out_dtype):
    M, K = x2d.shape
    N = w_bf16.shape[1]
    tm = _tile_candidates(M, 512)[0]
    tn = _tile_cols(N, 512)
    # TODO(synk): K is kept VMEM-resident; for very large d_model add a K grid axis
    # with an f32 VMEM accumulator.
    return pl.pallas_call(
        _linear_kernel,
        out_shape=jax.ShapeDtypeStruct((M, N), out_dtype),
        grid=(M // tm, N // tn),
        in_specs=[pl.BlockSpec((tm, K), lambda i, j: (i, 0)),
                  pl.BlockSpec((K, tn), lambda i, j: (0, j)),
                  pl.BlockSpec((1, tn), lambda i, j: (0, j))],
        out_specs=pl.BlockSpec((tm, tn), lambda i, j: (i, j)),
        compiler_params=pltpu.CompilerParams(
            dimension_semantics=("parallel", "parallel"),
            vmem_limit_bytes=_vmem_limit_bytes()),
    )(x2d, w_bf16, b_f32)


# ---------------------------------------------------------------------------
# Flash attention over the whole head block
#   grid = (B, q-tiles, kv-tiles); Q/K/V indexed straight from (B, S, 3, H, dh)
# ---------------------------------------------------------------------------
def _flash_kernel(q_ref, k_ref, v_ref, o_ref, m_sc, l_sc, acc_sc):
    # q_ref: (tq, H, dh)   k_ref / v_ref: (tk, H, dh)   o_ref: (tq, H*dh)
    qi = pl.program_id(1)
    ki = pl.program_id(2)
    nk = pl.num_programs(2)
    tq, H, dh = q_ref.shape
    tk = k_ref.shape[0]

    @pl.when(ki == 0)
    def _init():
        m_sc[...] = jnp.full_like(m_sc, -jnp.inf)
        l_sc[...] = jnp.zeros_like(l_sc)
        acc_sc[...] = jnp.zeros_like(acc_sc)

    first_col = ki * tk
    last_row = qi * tq + (tq - 1)

    # --- tile with at least one unmasked column: full QK / softmax / PV update ----
    @pl.when(first_col <= last_row)
    def _compute_tile():
        # cheap causal mask: (tq,1) vs (1,tk) iotas, broadcast by the compare.
        # Reference fills masked slots with -0.0001 (NOT -inf).
        row = qi * tq + lax.broadcasted_iota(jnp.int32, (tq, 1), 0)
        col = ki * tk + lax.broadcasted_iota(jnp.int32, (1, tk), 1)
        keep = col <= row                               # (tq, tk) bool
        q = q_ref[...]
        k = k_ref[...]
        v = v_ref[...]
        for h in range(H):                              # static unroll over heads
            # scores; 1/sqrt(head_dim) already folded into the q projection
            s = lax.dot_general(q[:, h, :], k[:, h, :], (((1,), (1,)), ((), ())),
                                preferred_element_type=jnp.float32)   # (tq, tk)
            s = jnp.where(keep, s, -0.0001)
            m_prev = m_sc[h]
            m_new = jnp.maximum(m_prev, jnp.max(s, axis=-1, keepdims=True))
            alpha = jnp.exp(m_prev - m_new)
            p = jnp.exp(s - m_new)
            l_sc[h] = alpha * l_sc[h] + jnp.sum(p, axis=-1, keepdims=True)
            acc_sc[h] = alpha * acc_sc[h] + jnp.dot(
                p.astype(jnp.bfloat16), v[:, h, :],
                preferred_element_type=jnp.float32)
            m_sc[h] = m_new

    # --- fully-masked tile: every score equals the constant -0.0001, so skip the QK
    #     matmul and replace P@V with p_const * column_sum(V). These tiles still
    #     contribute to the softmax (the reference masks with -0.0001, not -inf). ----
    @pl.when(first_col > last_row)
    def _const_tile():
        v = v_ref[...]
        for h in range(H):
            m_prev = m_sc[h]
            m_new = jnp.maximum(m_prev, -0.0001)
            alpha = jnp.exp(m_prev - m_new)
            p_const = jnp.exp(-0.0001 - m_new)                        # (tq, 1)
            l_sc[h] = alpha * l_sc[h] + tk * p_const
            vsum = jnp.sum(v[:, h, :].astype(jnp.float32), axis=0, keepdims=True)
            acc_sc[h] = alpha * acc_sc[h] + p_const * vsum
            m_sc[h] = m_new

    @pl.when(ki == nk - 1)
    def _finalize():
        # exact reciprocal (runs once per q tile) -> tighter parity with the reference;
        # lane-dense (tq, H*dh) store, which is exactly the layout out_net consumes.
        outs = [acc_sc[h] / l_sc[h] for h in range(H)]
        o_ref[...] = jnp.concatenate(outs, axis=-1).astype(o_ref.dtype)


def _flash_attention(qkv, H, dh):
    """qkv: (B, S, 3, H, dh) bf16 (q columns pre-scaled). Returns (B, S, H*dh) bf16."""
    B, S = qkv.shape[0], qkv.shape[1]
    tq, tk = _flash_tiles(S, H)
    return pl.pallas_call(
        _flash_kernel,
        out_shape=jax.ShapeDtypeStruct((B, S, H * dh), jnp.bfloat16),
        grid=(B, S // tq, S // tk),
        in_specs=[
            pl.BlockSpec((None, tq, None, H, dh), lambda b, i, j: (b, i, 0, 0, 0)),
            pl.BlockSpec((None, tk, None, H, dh), lambda b, i, j: (b, j, 1, 0, 0)),
            pl.BlockSpec((None, tk, None, H, dh), lambda b, i, j: (b, j, 2, 0, 0)),
        ],
        out_specs=pl.BlockSpec((None, tq, H * dh), lambda b, i, j: (b, i, 0)),
        scratch_shapes=[pltpu.VMEM((H, tq, 1), jnp.float32),
                        pltpu.VMEM((H, tq, 1), jnp.float32),
                        pltpu.VMEM((H, tq, dh), jnp.float32)],
        compiler_params=pltpu.CompilerParams(
            dimension_semantics=("parallel", "parallel", "arbitrary"),
            vmem_limit_bytes=_vmem_limit_bytes()),
        # TODO(synk): sweep pipeline_mode=pl.Buffered(3) on the K/V specs if the K/V
        # DMA turns out to be exposed for very small head_dim.
    )(qkv, qkv, qkv)


# ---------------------------------------------------------------------------
# Full Attention module forward (memory=None causal path, eval mode)
# ---------------------------------------------------------------------------
def attention(x, params, *, n_heads, head_dim=None):
    """x: (B, S, d_model) float32. Returns (B, S, d_model) float32."""
    B, S, D = x.shape
    H = n_heads
    dh = head_dim if head_dim is not None else D // H
    split = H * dh
    scale = 1.0 / math.sqrt(dh)

    wqkv = params["wqkv"].astype(jnp.float32)          # (D, 3*split)
    bqkv = params["bqkv"].astype(jnp.float32)          # (1, 3*split)
    # fold 1/sqrt(head_dim) into the q columns of the qkv projection (zero runtime cost)
    col_scale = jnp.concatenate([jnp.full((split,), scale, jnp.float32),
                                 jnp.ones((2 * split,), jnp.float32)])
    wqkv_bf16 = (wqkv * col_scale[None, :]).astype(jnp.bfloat16)
    bqkv_f32 = bqkv * col_scale[None, :]

    # ---- fused QKV projection (batch folded into the matmul M dimension) ----
    qkv = _linear(x.reshape(B * S, D), wqkv_bf16, bqkv_f32, jnp.bfloat16)
    # contiguous (free) reshape; heads are indexed by the flash BlockSpecs directly,
    # so there are no transposes / extra HBM round trips around the attention kernel.
    qkv = qkv.reshape(B, S, 3, H, dh)

    # ---- flash attention (causal, -0.0001 masked fill per the reference) ----
    o = _flash_attention(qkv, H, dh)                   # (B, S, H*dh) bf16, lane-dense

    # ---- output projection back to d_model ----
    wout_bf16 = params["wout"].astype(jnp.bfloat16)    # (split, D)
    bout_f32 = params["bout"].astype(jnp.float32)      # (1, D)
    out = _linear(o.reshape(B * S, split), wout_bf16, bout_f32, jnp.float32)
    # TODO(synk): attn_drop / pre_res_drop are identity (eval mode); training-mode
    # stochastic dropout masks are not reproduced in-kernel.
    return out.reshape(B, S, D)


# Pure-JAX reference (matches the PyTorch forward, memory=None path) for sanity check
def attention_ref(x, params, *, n_heads, head_dim=None):
    B, S, D = x.shape
    H = n_heads
    dh = head_dim if head_dim is not None else D // H
    split = H * dh
    qkv = x @ params["wqkv"] + params["bqkv"][0]
    q, k, v = qkv[..., :split], qkv[..., split:2 * split], qkv[..., 2 * split:]
    q = q.reshape(B, S, H, dh).transpose(0, 2, 1, 3)
    k = k.reshape(B, S, H, dh).transpose(0, 2, 1, 3)
    v = v.reshape(B, S, H, dh).transpose(0, 2, 1, 3)
    a = jnp.einsum('bhqd,bhkd->bhqk', q, k) / math.sqrt(dh)
    mask = jnp.tril(jnp.ones((S, S), bool))
    a = jnp.where(mask[None, None], a, -0.0001)
    a = jax.nn.softmax(a, axis=-1)
    o = jnp.einsum('bhqk,bhkd->bhqd', a, v)
    o = o.transpose(0, 2, 1, 3).reshape(B, S, split)
    return o @ params["wout"] + params["bout"][0]


def init_params(key, d_model, n_heads, head_dim):
    """Deterministic synthetic params. Dense weights stored as (in, out): the kernel
    computes x @ W + b, matching PyTorch's x @ W_torch.T + b."""
    split = n_heads * head_dim
    ks = jax.random.split(key, 4)
    s = 0.02
    return {
        "wqkv": s * jax.random.normal(ks[0], (d_model, 3 * split), jnp.float32),
        "bqkv": s * jax.random.normal(ks[1], (1, 3 * split), jnp.float32),
        # TODO(synk): reference ctor `nn.Linear(n_heads*head_dim, bias=True)` is missing
        # out_features; interpreted as Linear(n_heads*head_dim -> d_model).
        "wout": s * jax.random.normal(ks[2], (split, d_model), jnp.float32),
        "bout": s * jax.random.normal(ks[3], (1, d_model), jnp.float32),
    }


if __name__ == "__main__":
    # TODO(synk): memory / attn_mask / head_mask / output_attn branches of the reference
    # forward are not implemented (default no-memory causal path only).

    # small shapes consistent with the module: d_model=32, n_heads=4, head_dim=8, seq=8
    B, S, D, H = 2, 8, 32, 4
    dh = D // H
    key = jax.random.PRNGKey(0)
    kx, kp = jax.random.split(key)
    x = jax.random.normal(kx, (B, S, D), jnp.float32)
    params = init_params(kp, D, H, dh)

    out = attention(x, params, n_heads=H, head_dim=dh)
    out = jax.block_until_ready(out)
    assert out.shape == (B, S, D) and out.dtype == jnp.float32
    ref = attention_ref(x, params, n_heads=H, head_dim=dh)
    err = float(jnp.max(jnp.abs(out - ref)))
    assert err < 5e-2, f"max abs error too large (S=8): {err}"

    # second check with a longer sequence so the multi-tile causal paths
    # (diagonal tiles + fully-masked constant-score fast path) are exercised
    S2 = 512
    x2 = jax.random.normal(jax.random.PRNGKey(1), (B, S2, D), jnp.float32)
    out2 = attention(x2, params, n_heads=H, head_dim=dh)
    out2 = jax.block_until_ready(out2)
    ref2 = attention_ref(x2, params, n_heads=H, head_dim=dh)
    err2 = float(jnp.max(jnp.abs(out2 - ref2)))
    assert err2 < 5e-2, f"max abs error too large (S=512): {err2}"

    print("KERNEL_OK")
</pallas_src>

<mosaic_0001>
module attributes {stable_mosaic.version = 11 : i64} {
  func.func @_linear_kernel(%arg0: i32, %arg1: i32, %arg2: memref<16x32xf32, #tpu.memory_space<vmem>>, %arg3: memref<32x96xbf16, #tpu.memory_space<vmem>>, %arg4: memref<1x96xf32, #tpu.memory_space<vmem>>, %arg5: memref<16x96xbf16, #tpu.memory_space<vmem>>) attributes {dimension_semantics = [#tpu.dimension_semantics<parallel>, #tpu.dimension_semantics<parallel>], iteration_bounds = array<i64: 1, 1>, scalar_prefetch = 0 : i64, scratch_operands = 0 : i64, tpu.core_type = #tpu.core_type<tc>, window_params = [{transform_indices = @transform_0, window_bounds = array<i64: 16, 32>}, {transform_indices = @transform_1, window_bounds = array<i64: 32, 96>}, {transform_indices = @transform_2, window_bounds = array<i64: 1, 96>}, {transform_indices = @transform_3, window_bounds = array<i64: 16, 96>}]} {
    %c0 = arith.constant 0 : index
    %c0_0 = arith.constant 0 : index
    %0 = vector.load %arg2[%c0, %c0_0] : memref<16x32xf32, #tpu.memory_space<vmem>>, vector<16x32xf32>
    %1 = arith.truncf %0 : vector<16x32xf32> to vector<16x32xbf16>
    %c0_1 = arith.constant 0 : index
    %c0_2 = arith.constant 0 : index
    %2 = vector.load %arg3[%c0_1, %c0_2] : memref<32x96xbf16, #tpu.memory_space<vmem>>, vector<32x96xbf16>
    %cst = arith.constant dense<0.000000e+00> : vector<16x96xf32>
    %3 = tpu.matmul %1, %2, %cst {dimension_numbers = #tpu.dot_dimension_numbers<[1], [0], [0], [1], [0, 0, 1, 1], [], []>} : vector<16x32xbf16>, vector<32x96xbf16>, vector<16x96xf32> -> vector<16x96xf32>
    %c0_3 = arith.constant 0 : index
    %c0_4 = arith.constant 0 : index
    %4 = vector.load %arg4[%c0_3, %c0_4] : memref<1x96xf32, #tpu.memory_space<vmem>>, vector<1x96xf32>
    %5 = vector.broadcast %4 : vector<1x96xf32> to vector<16x96xf32>
    %6 = arith.addf %3, %5 : vector<16x96xf32>
    %7 = arith.truncf %6 : vector<16x96xf32> to vector<16x96xbf16>
    %c0_5 = arith.constant 0 : index
    %c0_6 = arith.constant 0 : index
    %8 = vector.load %arg5[%c0_5, %c0_6] : memref<16x96xbf16, #tpu.memory_space<vmem>>, vector<16x96xbf16>
    tpu.vector_store %arg5[%c0_5, %c0_6], %7 {strides = array<i32>} : memref<16x96xbf16, #tpu.memory_space<vmem>>, vector<16x96xbf16>,
    return
  }
  func.func @transform_0(%arg0: i32, %arg1: i32) -> (i32, i32) {
    %c0_i32 = arith.constant 0 : i32
    %c0_i32_0 = arith.constant 0 : i32
    return %arg0, %c0_i32 : i32, i32
  }
  func.func @transform_1(%arg0: i32, %arg1: i32) -> (i32, i32) {
    %c0_i32 = arith.constant 0 : i32
    %c0_i32_0 = arith.constant 0 : i32
    return %c0_i32, %arg1 : i32, i32
  }
  func.func @transform_2(%arg0: i32, %arg1: i32) -> (i32, i32) {
    %c0_i32 = arith.constant 0 : i32
    %c0_i32_0 = arith.constant 0 : i32
    return %c0_i32, %arg1 : i32, i32
  }
  func.func @transform_3(%arg0: i32, %arg1: i32) -> (i32, i32) {
    %c0_i32 = arith.constant 0 : i32
    return %arg0, %arg1 : i32, i32
  }
}

</mosaic_0001>

<bundles_post_ra>
// kernel: tpu_custom_call.1
= control target key start
LH: loop header
LB: loop body
LE: loop exit
PB: predicated region body
PF: predicated region fallthrough
CT: control target
= control target key end

     0   :  { %8 = vsyncpa [#allocation3], 0  ;;  %s256_s0 = inlined_call_operand.hbm [shape: f32[16,32], index: 0, kind: input, shape index: {}]   ;;  %s257_s1 = inlined_call_operand.hbm [shape: bf16[32,96], index: 1, kind: input, shape index: {}]   ;;  %s258_s2 = inlined_call_operand.vmem [shape: f32[1,96], index: 2, kind: input, shape index: {}]   ;;  %s259_s3 = inlined_call_operand.hbm [shape: bf16[16,96], index: 3, kind: output, shape index: {}]  }
   0x1   :  { %9 = vsyncpa [#allocation6], 0 }
   0x2   :  { %10 = vsyncpa [#allocation4], 0  ;;  %s15_s14 = sshll.u32 %s256_s0, 4  ;;  %s211_s15 = smov [#allocation2]   ;;  %s16_s14 = int_to_ptr.hbm [resolvable:$true] %s15_s14 }
   0x3   :  { %s17_s16 = sshll.u32 %s211_s15, 4  ;;  %s28_s19 = sshll.u32 %s257_s1, 4  ;;  %s18_s16 = int_to_ptr.vmem [resolvable:$true] %s17_s16  ;;  %s29_s19 = int_to_ptr.hbm [resolvable:$true] %s28_s19 }
   0x4   :  { %s212_s20 = smov 128   ;;  %s213_s21 = smov 8  }
   0x5   :  { %23 = dma.hbm_to_vmem [thread:$0]  %s16_s14, 256, %s18_s16, [#allocation3], %s212_s20, %s212_s20, %s213_s21  }
   0x6   :  { %s214_s22 = smov [#allocation5]   ;;  %s215_s24 = smov 64  }
   0x7   :  { %s30_s23 = sshll.u32 %s214_s22, 4  ;;  %s216_s25 = smov 4   ;;  %s31_s23 = int_to_ptr.vmem [resolvable:$true] %s30_s23 }
   0x8   :  { %36 = dma.hbm_to_vmem [thread:$0]  %s29_s19, 256, %s31_s23, [#allocation6], %s215_s24, %s215_s24, %s216_s25  }
   0x9   :  { %205 = dma.done.wait [#allocation3], 256  }
   0xa   :  { %206 = vsyncadd [#allocation3], 4294967040 }
   0xb   :  { %207 = dma.done.wait [#allocation6], 256  }
   0xc   :  { %208 = vsyncadd [#allocation6], 4294967040  ;;  %v124_v0 = vld [vmem:[#allocation5 + $0x8] sm:$0xff]  ;;  %v123_v1 = vld [vmem:[#allocation5] sm:$0xff]  ;;  %vm71_vm0 = vcmask 261120   ;;  %vm91_vm1 = vcmask 781312  }
   0xd   :  { %81 = vmatpush.bf16.msra.mxu0 %v124_v0  ;;  %v48_v2 = vld [vmem:[#allocation2] sm:$0xff]  ;;  %v49_v3 = vld [vmem:[#allocation2 + $0x8] sm:$0xff]  ;;  %s217_s26 = smov [#allocation7]   ;;  %s100_s30 = sshll.u32 %s259_s3, 4  ;;  %s101_s30 = int_to_ptr.hbm [resolvable:$true] %s100_s30 }
   0xe   :  { %v50_v4 = vpack.c.bf16 %v49_v3, %v48_v2  ;;  %v132_v5 = vld [vmem:[%s258_s2] ss:$0 sm:$0xff]  ;;  %s98_s27 = sshll.u32 %s217_s26, 4  ;;  %s99_s27 = int_to_ptr.vmem [resolvable:$true] %s98_s27 }
  0x11   :  { %82 = vmatpush.bf16.msra.mxu0 %v123_v1 }
  0x14   :  { %122 = vmatmul.msk.bf16.vlgmr.msra.gmra.mxu0 %vm71_vm0, %v50_v4 }
  0x91   :  { %v84_v6 = vpop.f32.mrf.mxu0 }
  0x92   :  { %v85_v7 = vadd.f32 %v132_v5, %v84_v6 }
  0x94   :  { %v89_v8 = vpack.c.bf16 %v85_v7, %v85_v7 }
  0x96   :  { %92 = vst.msk [vmem:[#allocation7] sm:$0xf] %vm91_vm1, %v89_v8 }
  0x99   :  { %v86_v9 = vpop.f32.mrf.mxu0 }
  0x9a   :  { %v87_v10 = vadd.f32 %v132_v5, %v86_v9 }
  0x9c   :  { %v90_v11 = vpack.c.bf16 %v87_v10, %v87_v10 }
  0x9e   :  { %93 = vst.msk [vmem:[#allocation7 + $0x4] sm:$0xf] %vm91_vm1, %v90_v11 }
  0x9f   :  { %106 = dma.vmem_to_hbm [thread:$0]  %s99_s27, 128, %s101_s30, [#allocation4], %s215_s24, %s215_s24, %s216_s25  }
  0xa0   :  { %209 = dma.done.wait [#allocation4], 128  }
  0xa1   :  { %210 = vsyncadd [#allocation4], 4294967168 }
  0xa2   :  { %111 = vsyncpa [#allocation3], 1 }
  0xa3   :  { %112 = vsyncpa [#allocation6], 1 }
  0xa4   :  { %113 = vsyncpa [#allocation4], 1 }

</bundles_post_ra>
